<compile_context>
chip_gen: v7x
topology: tpu7x:2x2x1
jax: 0.10.0
libtpu: 0.0.40
codegen_flags: <defaults>
</compile_context>

<pallas_src>
import functools

import numpy as np
import jax
import jax.numpy as jnp
from jax.experimental import pallas as pl
from jax.experimental.pallas import tpu as pltpu


def _disalign_ce_kernel(logits_ref, target_ref, wt_ref, out_ref, *, n_rows, block_rows):
    x = logits_ref[...].astype(jnp.float32)              # (TN, C) f32 (upcast in-kernel)
    t = target_ref[...]                                   # (TN, 1) int32
    w_t = wt_ref[...]                                     # (TN, 1) f32 (pre-gathered weight)

    # log-softmax NLL per row — single exp pass over the tile.
    m = jnp.max(x, axis=1, keepdims=True)                 # (TN, 1)
    z = x - m
    se = jnp.sum(jnp.exp(z), axis=1, keepdims=True)       # (TN, 1)
    cls_ids = jax.lax.broadcasted_iota(jnp.int32, x.shape, 1)
    z_t = jnp.sum(jnp.where(cls_ids == t, z, 0.0), axis=1, keepdims=True)  # z[i, t_i]
    nll = jnp.log(se) - z_t                                # (TN, 1)

    # Mask rows past the true batch size (ragged last tile — no wrapper-side pad).
    row_ids = jax.lax.broadcasted_iota(jnp.int32, (block_rows, 1), 0)
    valid = (pl.program_id(0) * block_rows + row_ids) < n_rows
    wnll = jnp.sum(jnp.where(valid, w_t * nll, 0.0), keepdims=True)   # (1, 1)
    wsum = jnp.sum(jnp.where(valid, w_t, 0.0), keepdims=True)         # (1, 1)

    # Per-tile partials packed into one aligned (8, 128) block:
    #   sublane 0 = wnll (broadcast over lanes), sublane 1 = wsum, rest = 0.
    sub = jax.lax.broadcasted_iota(jnp.int32, (8, 128), 0)
    out_ref[...] = jnp.where(sub == 0, wnll, jnp.where(sub == 1, wsum, 0.0))


def _vmem_capacity_bytes():
    try:
        return int(pltpu.get_tpu_info().vmem_capacity_bytes)
    except Exception:
        return 64 * 1024 * 1024     # conservative: v7x per-TensorCore VMEM


def _choose_block_rows(n, c, itemsize, vmem_bytes):
    # Per-tile working set per row:
    #   * double-buffered native-dtype logits tile: 2 * C * itemsize
    #   * ~4 f32 (TN, C) temporaries in-kernel (x upcast, z, exp(z), select)
    per_row = 2 * c * itemsize + 4 * c * 4
    budget = vmem_bytes // 2                               # leave headroom for compiler scratch
    tn_mem = max(8, budget // per_row)
    # Keep >= ~4 tiles so v7x's two TensorCores each get >= 2 (megacore + pipelining).
    tn_par = max(8, (n // 4) // 8 * 8)
    tn = min(tn_mem, 1024, tn_par)
    return max(8, (tn // 8) * 8)


def disalign_loss_pallas(output_logits, target, per_cls_weights, *, block_rows=None):
    """Weighted cross-entropy (DisAlignLoss.forward). Logits kept in native dtype."""
    n, c = output_logits.shape
    itemsize = jnp.dtype(output_logits.dtype).itemsize
    vmem_bytes = _vmem_capacity_bytes()

    tn = block_rows if block_rows is not None else _choose_block_rows(n, c, itemsize, vmem_bytes)
    num_tiles = pl.cdiv(n, tn)

    t2 = target.reshape(n, 1).astype(jnp.int32)
    # Wrapper-side weight gather (tiny N-element gather; keeps the (1, C) weight
    # row and a full (TN, C) multiply pass out of the kernel).
    w_t = per_cls_weights.astype(jnp.float32)[target].reshape(n, 1)

    kernel = functools.partial(_disalign_ce_kernel, n_rows=n, block_rows=tn)

    out = pl.pallas_call(
        kernel,
        out_shape=jax.ShapeDtypeStruct((num_tiles * 8, 128), jnp.float32),
        grid_spec=pltpu.PrefetchScalarGridSpec(
            num_scalar_prefetch=0,
            grid=(num_tiles,),
            in_specs=[pl.BlockSpec((tn, c), lambda i: (i, 0)),   # logits tile (native dtype)
                      pl.BlockSpec((tn, 1), lambda i: (i, 0)),   # targets tile
                      pl.BlockSpec((tn, 1), lambda i: (i, 0))],  # per-row class weight
            out_specs=pl.BlockSpec((8, 128), lambda i: (i, 0))), # per-tile packed partials
        compiler_params=pltpu.CompilerParams(
            dimension_semantics=("parallel",),
            vmem_limit_bytes=int(vmem_bytes * 3 // 4)),
        cost_estimate=pl.CostEstimate(
            flops=6 * n * c,
            transcendentals=n * c + n,
            bytes_accessed=n * c * itemsize + 2 * n * 4 + num_tiles * 8 * 128 * 4),
    )(output_logits, t2, w_t)

    # Decode per-tile partials and combine (keeps the grid axis carry-free).
    wnll = jnp.sum(out[0::8, 0])
    wsum = jnp.sum(out[1::8, 0])
    return wnll / wsum


def disalign_loss_ref(output_logits, target, per_cls_weights):
    """Pure-JAX reference mirroring F.cross_entropy(..., weight=w, reduction='mean')."""
    x = output_logits.astype(jnp.float32)
    logp = jax.nn.log_softmax(x, axis=1)
    nll = -jnp.take_along_axis(logp, target[:, None].astype(jnp.int32), axis=1)[:, 0]
    w_t = per_cls_weights.astype(jnp.float32)[target]
    return jnp.sum(w_t * nll) / jnp.sum(w_t)


if __name__ == "__main__":
    # ---- deterministic module "parameters" derived from cls_num_list ----
    C = 16         # number of classes
    N = 10         # batch (non-multiple of 8 -> exercises the ragged-tail path)
    p_exp = 1.5
    cls_num_list = np.array([100, 60, 40, 30, 20, 15, 12, 10,
                             8, 6, 5, 4, 3, 3, 2, 2], dtype=np.float64)

    # per_cls_weights exactly as used by DisAlignLoss.forward()
    w = cls_num_list / cls_num_list.sum()
    w = 1.0 / w
    per_cls_weights = np.power(w, p_exp)

    # ---- deterministic inputs ----
    key = jax.random.PRNGKey(0)
    k1, k2 = jax.random.split(key)
    logits_f32 = jax.random.normal(k1, (N, C), dtype=jnp.float32) * 2.0
    target = jax.random.randint(k2, (N,), 0, C, dtype=jnp.int32)
    w_j = jnp.asarray(per_cls_weights, dtype=jnp.float32)

    # float32 path
    loss = jax.block_until_ready(disalign_loss_pallas(logits_f32, target, w_j))
    loss_ref = jax.block_until_ready(disalign_loss_ref(logits_f32, target, w_j))
    assert np.isfinite(float(loss))
    np.testing.assert_allclose(float(loss), float(loss_ref), rtol=1e-4, atol=1e-5)

    # native-bf16 path (no wrapper-side f32 cast -> half the logits HBM traffic)
    logits_bf16 = logits_f32.astype(jnp.bfloat16)
    loss_bf = jax.block_until_ready(disalign_loss_pallas(logits_bf16, target, w_j))
    loss_bf_ref = jax.block_until_ready(disalign_loss_ref(logits_bf16, target, w_j))
    assert np.isfinite(float(loss_bf))
    np.testing.assert_allclose(float(loss_bf), float(loss_bf_ref), rtol=2e-4, atol=1e-4)

    # multi-tile + ragged-tail case (still small): N=200, C=128, bf16 logits,
    # uniform class weights restricted to the first 128 class counts pattern.
    C2, N2 = 128, 200
    cls2 = np.linspace(200.0, 2.0, C2)
    w2 = np.power(1.0 / (cls2 / cls2.sum()), p_exp)
    k3, k4 = jax.random.split(k2)
    logits2 = (jax.random.normal(k3, (N2, C2), dtype=jnp.float32) * 3.0).astype(jnp.bfloat16)
    target2 = jax.random.randint(k4, (N2,), 0, C2, dtype=jnp.int32)
    w2_j = jnp.asarray(w2, dtype=jnp.float32)
    l2 = jax.block_until_ready(disalign_loss_pallas(logits2, target2, w2_j))
    l2_ref = jax.block_until_ready(disalign_loss_ref(logits2, target2, w2_j))
    assert np.isfinite(float(l2))
    np.testing.assert_allclose(float(l2), float(l2_ref), rtol=2e-4, atol=1e-4)

    print("KERNEL_OK")
</pallas_src>

<mosaic_0001>
module attributes {stable_mosaic.version = 11 : i64} {
  func.func @_disalign_ce_kernel(%arg0: i32, %arg1: memref<8x16xf32, #tpu.memory_space<vmem>>, %arg2: memref<8x1xi32, #tpu.memory_space<vmem>>, %arg3: memref<8x1xf32, #tpu.memory_space<vmem>>, %arg4: memref<8x128xf32, #tpu.memory_space<vmem>>) attributes {dimension_semantics = [#tpu.dimension_semantics<parallel>], iteration_bounds = array<i64: 2>, scalar_prefetch = 0 : i64, scratch_operands = 0 : i64, tpu.core_type = #tpu.core_type<tc>, window_params = [{transform_indices = @transform_0, window_bounds = array<i64: 8, 16>}, {transform_indices = @transform_1, window_bounds = array<i64: 8, 1>}, {transform_indices = @transform_2, window_bounds = array<i64: 8, 1>}, {transform_indices = @transform_3, window_bounds = array<i64: 8, 128>}]} {
    %c0 = arith.constant 0 : index
    %c0_0 = arith.constant 0 : index
    %0 = vector.load %arg1[%c0, %c0_0] : memref<8x16xf32, #tpu.memory_space<vmem>>, vector<8x16xf32>
    %c0_1 = arith.constant 0 : index
    %c0_2 = arith.constant 0 : index
    %1 = vector.load %arg2[%c0_1, %c0_2] : memref<8x1xi32, #tpu.memory_space<vmem>>, vector<8x1xi32>
    %c0_3 = arith.constant 0 : index
    %c0_4 = arith.constant 0 : index
    %2 = vector.load %arg3[%c0_3, %c0_4] : memref<8x1xf32, #tpu.memory_space<vmem>>, vector<8x1xf32>
    %cst = arith.constant dense<0xFF800000> : vector<8xf32>
    %3 = vector.multi_reduction <maximumf>, %0, %cst [1] : vector<8x16xf32> to vector<8xf32>
    %4 = vector.shape_cast %3 : vector<8xf32> to vector<8x1xf32>
    %5 = vector.broadcast %4 : vector<8x1xf32> to vector<8x16xf32>
    %6 = arith.subf %0, %5 : vector<8x16xf32>
    %7 = math.exp %6 : vector<8x16xf32>
    %cst_5 = arith.constant dense<0.000000e+00> : vector<8xf32>
    %8 = vector.multi_reduction <add>, %7, %cst_5 [1] : vector<8x16xf32> to vector<8xf32>
    %9 = vector.shape_cast %8 : vector<8xf32> to vector<8x1xf32>
    %10 = tpu.iota {dimensions = array<i32: 1>} : vector<8x16xi32>
    %11 = vector.broadcast %1 : vector<8x1xi32> to vector<8x16xi32>
    %12 = arith.cmpi eq, %10, %11 : vector<8x16xi32>
    %cst_6 = arith.constant 0.000000e+00 : f32
    %13 = vector.broadcast %cst_6 : f32 to vector<8x16xf32>
    %14 = arith.select %12, %6, %13 : vector<8x16xi1>, vector<8x16xf32>
    %cst_7 = arith.constant dense<0.000000e+00> : vector<8xf32>
    %15 = vector.multi_reduction <add>, %14, %cst_7 [1] : vector<8x16xf32> to vector<8xf32>
    %16 = vector.shape_cast %15 : vector<8xf32> to vector<8x1xf32>
    %17 = math.log %9 : vector<8x1xf32>
    %18 = arith.subf %17, %16 : vector<8x1xf32>
    %19 = tpu.iota {dimensions = array<i32: 0>} : vector<8x1xi32>
    %c8_i32 = arith.constant 8 : i32
    %20 = arith.muli %arg0, %c8_i32 : i32
    %21 = vector.broadcast %20 : i32 to vector<8x1xi32>
    %22 = arith.addi %21, %19 : vector<8x1xi32>
    %c10_i32 = arith.constant 10 : i32
    %23 = vector.broadcast %c10_i32 : i32 to vector<8x1xi32>
    %24 = arith.cmpi slt, %22, %23 : vector<8x1xi32>
    %25 = arith.mulf %2, %18 : vector<8x1xf32>
    %cst_8 = arith.constant 0.000000e+00 : f32
    %26 = vector.broadcast %cst_8 : f32 to vector<8x1xf32>
    %27 = arith.select %24, %25, %26 : vector<8x1xi1>, vector<8x1xf32>
    %28 = vector.shape_cast %27 : vector<8x1xf32> to vector<1x8x1xf32>
    %cst_9 = arith.constant dense<0.000000e+00> : vector<1xf32>
    %29 = vector.multi_reduction <add>, %28, %cst_9 [1, 2] : vector<1x8x1xf32> to vector<1xf32>
    %30 = vector.shape_cast %29 : vector<1xf32> to vector<1x1x1xf32>
    %31 = vector.extract %30[0, 0, 0] : f32 from vector<1x1x1xf32>
    %32 = vector.broadcast %31 : f32 to vector<1x1xf32>
    %cst_10 = arith.constant 0.000000e+00 : f32
    %33 = vector.broadcast %cst_10 : f32 to vector<8x1xf32>
    %34 = arith.select %24, %2, %33 : vector<8x1xi1>, vector<8x1xf32>
    %35 = vector.shape_cast %34 : vector<8x1xf32> to vector<1x8x1xf32>
    %cst_11 = arith.constant dense<0.000000e+00> : vector<1xf32>
    %36 = vector.multi_reduction <add>, %35, %cst_11 [1, 2] : vector<1x8x1xf32> to vector<1xf32>
    %37 = vector.shape_cast %36 : vector<1xf32> to vector<1x1x1xf32>
    %38 = vector.extract %37[0, 0, 0] : f32 from vector<1x1x1xf32>
    %39 = vector.broadcast %38 : f32 to vector<1x1xf32>
    %40 = tpu.iota {dimensions = array<i32: 0>} : vector<8x128xi32>
    %c0_i32 = arith.constant 0 : i32
    %41 = vector.broadcast %c0_i32 : i32 to vector<8x128xi32>
    %42 = arith.cmpi eq, %40, %41 : vector<8x128xi32>
    %c1_i32 = arith.constant 1 : i32
    %43 = vector.broadcast %c1_i32 : i32 to vector<8x128xi32>
    %44 = arith.cmpi eq, %40, %43 : vector<8x128xi32>
    %cst_12 = arith.constant 0.000000e+00 : f32
    %45 = vector.shape_cast %39 : vector<1x1xf32> to vector<1x1xf32>
    %46 = vector.broadcast %45 : vector<1x1xf32> to vector<8x128xf32>
    %47 = vector.broadcast %cst_12 : f32 to vector<8x128xf32>
    %48 = arith.select %44, %46, %47 : vector<8x128xi1>, vector<8x128xf32>
    %49 = vector.shape_cast %32 : vector<1x1xf32> to vector<1x1xf32>
    %50 = vector.broadcast %49 : vector<1x1xf32> to vector<8x128xf32>
    %51 = arith.select %42, %50, %48 : vector<8x128xi1>, vector<8x128xf32>
    %c0_13 = arith.constant 0 : index
    %c0_14 = arith.constant 0 : index
    %52 = vector.load %arg4[%c0_13, %c0_14] : memref<8x128xf32, #tpu.memory_space<vmem>>, vector<8x128xf32>
    tpu.vector_store %arg4[%c0_13, %c0_14], %51 {strides = array<i32>} : memref<8x128xf32, #tpu.memory_space<vmem>>, vector<8x128xf32>,
    return
  }
  func.func @transform_0(%arg0: i32) -> (i32, i32) {
    %c0_i32 = arith.constant 0 : i32
    %c0_i32_0 = arith.constant 0 : i32
    return %arg0, %c0_i32 : i32, i32
  }
  func.func @transform_1(%arg0: i32) -> (i32, i32) {
    %c0_i32 = arith.constant 0 : i32
    %c0_i32_0 = arith.constant 0 : i32
    return %arg0, %c0_i32 : i32, i32
  }
  func.func @transform_2(%arg0: i32) -> (i32, i32) {
    %c0_i32 = arith.constant 0 : i32
    %c0_i32_0 = arith.constant 0 : i32
    return %arg0, %c0_i32 : i32, i32
  }
  func.func @transform_3(%arg0: i32) -> (i32, i32) {
    %c0_i32 = arith.constant 0 : i32
    %c0_i32_0 = arith.constant 0 : i32
    return %arg0, %c0_i32 : i32, i32
  }
}

</mosaic_0001>

<bundles_post_ra>
// kernel: tpu_custom_call.1
= control target key start
LH: loop header
LB: loop body
LE: loop exit
PB: predicated region body
PF: predicated region fallthrough
CT: control target
= control target key end

     0   :  { %8 = vsyncpa [#allocation3], 0  ;;  %s623_s0 = inlined_call_operand.vmem [shape: f32[10,16], index: 0, kind: input, shape index: {}]   ;;  %s624_s1 = inlined_call_operand.vmem [shape: s32[10,1], index: 1, kind: input, shape index: {}]   ;;  %s625_s2 = inlined_call_operand.vmem [shape: f32[10,1], index: 2, kind: input, shape index: {}]   ;;  %s626_s3 = inlined_call_operand.hbm [shape: f32[16,128], index: 3, kind: output, shape index: {}]  }
   0x1   :  { %10 = vsyncpa [#allocation3 + $0x1], 0  ;;  %s508_s12 = smov 0   ;;  %s510_s13 = smov 0  }
   0x2   :  { %s512_s14 = smov 0   ;;  %s514_s15 = smov 0  }
   0x3 LB: > { %s529_s16 = sadd.s32 4294967295, %s484_s15   ;;  %s360_s17 = sadd.s32 4294967294, %s484_s15   ;;  %s484_s15 = sphi %s514_s15, %s632_s15   ;;  %s480_s14 = sphi %s512_s14, %s631_s14   ;;  %s476_s13 = sphi %s510_s13, %s630_s13   ;;  %s472_s12 = sphi %s508_s12, %s629_s12  }
   0x4   : > { %s533_s18 = sadd.s32 1, %s484_s15   ;;  %s101_s19 = sadd.s32 1, %s480_s14 }
   0x5   : > { %s98_s20 = ssub.s32 %s484_s15, %s533_s18  ;;  %p111_p0 = scmp.ne.s32.totalorder %s480_s14, %s476_s13 }
   0x6   : > { %p99_p1 = scmp.eq.s32.totalorder %s98_s20, 0  ;;  %p112_p2 = scmp.eq.s32.totalorder %s529_s16, 1 }
   0x7   : > { %p117_p3 = scmp.ne.s32.totalorder %s476_s13, %s472_s12  ;;  %p118_p4 = scmp.eq.s32.totalorder %s360_s17, 1 }
   0x8   : > { %s544_s21 = scalar_select %p99_p1, %s480_s14, %s101_s19  }
   0x9   : > { %p546_p5 = por %p112_p2, %p111_p0  ;;  %p550_p6 = por %p118_p4, %p117_p3 }
   0xa   : > { %p363_p7 = scmp.ge.s32.totalorder %s484_s15, 1  ;;  %p157_p8 = scmp.lt.s32.totalorder %s484_s15, 3 }
   0xc   : > { %p158_p9 = pnand %p363_p7, %p157_p8 }
   0xd   : > { %p188_p10 = scmp.lt.s32.totalorder (!%p158_p9), %s529_s16, 1  ;;  %v486_v0 = vmov (!%p158_p9), 0   ;;  %vm203_vm0 = vcmask (!%p158_p9), 130048   ;;  %v213_v7 = vlaneseq (!%p158_p9)  ;;  %s368_s5 = sshll.u32 (!%p158_p9), %s529_s16, 3  ;;  %vm234_vm3 = vcmask (!%p158_p9), 7168  }
   0xe   : > { %161 = sbr.rel (%p158_p9) target bundleno = 571 (0x23b), region = 32  ;;  %417 = vset.pattern.permute.xlu0 (!%p158_p9), %v486_v0  ;;  %v229_v16 = vstv (!%p158_p9), %s368_s5  ;;  %s185_s9 = sand.u32 (!%p158_p9), 1, %s476_s13  }
   0xf   : > { %v214_v8 = vand.u32 (!%p158_p9), 127, %v213_v7  ;;  %v227_v15 = vshrl.u32 (!%p158_p9), %v213_v7, 7  ;;  %s364_s10 = sshll.u32 (!%p158_p9), %s185_s9, 3  ;;  %s370_s11 = sshll.u32 (!%p158_p9), %s529_s16, 7 }
  0x10   : > { %s187_s19 = scalar_lea.vmem (!%p158_p9), [#allocation2], %s364_s10  ;;  %s581_s27 = scalar_lea.hbm (!%p158_p9), %s626_s3, %s370_s11 }
  0x11   : > { %v230_v18 = vadd.s32 (!%p158_p9), %v229_v16, %v227_v15  ;;  %vm257_vm4 = vcmp.eq.s32.totalorder (!%p158_p9), %v227_v15, 1  ;;  %s277_s20 = sshll.u32 (!%p158_p9), %s187_s19, 4  ;;  %vm256_vm5 = vcmp.eq.s32.totalorder (!%p158_p9), %v227_v15, 0  ;;  %s487_s29 = smov (!%p158_p9), [#allocation2]   ;;  %s583_s20 = int_to_ptr.vmem [resolvable:$true] %s277_s20 }
  0x12   : > { %s426_s30 = sshll.u32 (!%p158_p9), %s487_s29, 4  ;;  %s427_s30 = int_to_ptr.vmem [resolvable:$false] %s426_s30 }
  0x13   : > { %vm231_vm2 = vcmp.lt.s32.totalorder (!%p158_p9), %v230_v18, 10  ;;  %p429_p0 = scmp.lt.s32.totalorder (!%p158_p9), %s583_s20, %s427_s30 }
  0x15   : > { %s189_s24 = scalar_select %p188_p10, %s529_s16, 1 }
  0x16   : > { %s264_s16 = scalar_lea.sflag [#allocation3], %s185_s9 }
  0x17   : > { %s558_s25 = sshll.u32 %s189_s24, 3 }
  0x18   : > { %s191_s28 = scalar_lea.vmem %s623_s0, %s558_s25  ;;  %s195_s4 = scalar_lea.vmem %s624_s1, %s558_s25 }
  0x19   : > { %v200_v1 = vld [vmem:[%s191_s28] sm:$0xff]  ;;  %s199_s8 = scalar_lea.vmem %s625_s2, %s558_s25  ;;  %s422_s28 = scalar_lea.vmem %s583_s20, 128 }
  0x1a   : > { %v204_v2 = vsel %vm203_vm0, %v200_v1, -inf  ;;  %v201_v3 = vld [vmem:[%s195_s4] sm:$0xff]  ;;  %p423_p11 = scmp.ne.s32.totalorder %s583_s20, %s422_s28  ;;  %s428_s4 = scalar_lea.vmem %s427_s30, 256 }
  0x1b   : > { %205 = vmax.xlane.f32.xlu0 %v204_v2  ;;  %v202_v20 = vld [vmem:[%s199_s8] sm:$0xff]  ;;  %p430_p1 = scmp.lt.s32.totalorder %s428_s4, %s422_s28 }
  0x1c   : > { %v245_v25 = vsel %vm231_vm2, %v202_v20, 0.0  ;;  %p424_p12 = pnand %p423_p11, %p546_p5 }
  0x1d   : > { %v246_v27 = vsel %vm234_vm3, %v245_v25, 0.0  ;;  %p431_p2 = por %p430_p1, %p429_p0 }
  0x1e   : > { %p425_p13 = pneg %p424_p12 }
  0x20   : > { %p432_p3 = pnand %p431_p2, %p425_p13 }
  0x31   : > { %216 = vperm.xlu0 %417, %v201_v3  }
  0xa8   : > { %v206_v4 = vpop.xlane.xlu0 %205 }
  0xa9   : > { %v207_v5 = vsub.f32 %v200_v1, %v206_v4 }
  0xab   : > { %v208_v6 = vmul.f32 1.442695, %v207_v5 }
  0xad   : > { %418 = vpow2.f32 %v208_v6 }
  0xb0   : > { %v217_v9 = vpop.permute.xlu0 %216 }
  0xb1   : > { %vm218_vm1 = vcmp.eq.s32.totalorder %v214_v8, %v217_v9 }
  0xb2   : > { %v219_v12 = vsel %vm218_vm1, %v207_v5, 0.0 }
  0xb3   : > { %v220_v13 = vsel %vm203_vm0, %v219_v12, 0.0 }
  0xb7   : > { %v419_v10 = vpop.eup %418 }
  0xb8   : > { %v210_v11 = vsel %vm203_vm0, %v419_v10, 0.0 }
  0xb9   : > { %211 = vadd.xlane.f32.xlu1 %v210_v11 }
  0xbd   : > { %221 = vadd.xlane.f32.xlu1 %v220_v13 }
 0x146   : > { %v212_v14 = vpop.xlane.xlu1 %211 }
 0x147   : > { %420 = vlog2.f32 %v212_v14 }
 0x14a   : > { %v222_v21 = vpop.xlane.xlu1 %221 }
 0x151   : > { %v421_v17 = vpop.eup %420 }
 0x152   : > { %v224_v19 = vmul.f32 0.6931472, %v421_v17 }
 0x154   : > { %v225_v22 = vsub.f32 %v224_v19, %v222_v21 }
 0x156   : > { %v232_v23 = vmul.f32 %v225_v22, %v202_v20 }
 0x158   : > { %v233_v24 = vsel %vm231_vm2, %v232_v23, 0.0 }
 0x159   : > { %v235_v26 = vsel %vm234_vm3, %v233_v24, 0.0 }
 0x15a   : > { %236 = vadd.xlane.f32.xlu1 %v235_v26 }
 0x15e   : > { %247 = vadd.xlane.f32.xlu1 %v246_v27 }
 0x1e7   : > { %v237_v28 = vpop.xlane.xlu1 %236 }
 0x1e8   : > { %v238_v29 = vrot.slane %v237_v28, 4 }
 0x1ea   : > { %v239_v30 = vadd.f32 %v238_v29, %v237_v28 }
 0x1eb   : > { %v248_v31 = vpop.xlane.xlu1 %247 }
 0x1ec   : > { %v240_v32 = vrot.slane %v239_v30, 2  ;;  %v249_v33 = vrot.slane %v248_v31, 4 }
 0x1ee   : > { %v250_v34 = vadd.f32 %v249_v33, %v248_v31  ;;  %v241_v35 = vadd.f32 %v240_v32, %v239_v30 }
 0x1f0   : > { %v251_v36 = vrot.slane %v250_v34, 2  ;;  %v242_v37 = vrot.slane %v241_v35, 1 }
 0x1f2   : > { %v252_v38 = vadd.f32 %v251_v36, %v250_v34  ;;  %v243_v39 = vadd.f32 %v242_v37, %v241_v35 }
 0x1f4   : > { %373 = vpush %v243_v39  ;;  %v253_v40 = vrot.slane %v252_v38, 1 }
 0x1f6   : > { %v254_v41 = vadd.f32 %v253_v40, %v252_v38 }
 0x1f8   : > { %375 = vpush %v254_v41 }
 0x225   : > { %s374_s17 = spop %373 }
 0x226   : > { %v260_v43 = vstv %s374_s17 }
 0x229   : > { %s376_s24 = spop %375 }
 0x22a   : > { %v258_v42 = vstv %s376_s24 }
 0x22b   : > { %v259_v44 = vsel %vm257_vm4, %v258_v42, 0.0 }
 0x22c   : > { %v261_v45 = vsel %vm256_vm5, %v260_v43, %v259_v44 }
 0x22d   : > { %262 = vst [vmem:[%s187_s19] sm:$0xff] %v261_v45 }
 0x22e   : > { %435 = shalt.err (!%p432_p3)
}
 0x22f   : > { %s436_s5 = scalar_lea.hbm %s581_s27, 128  ;;  %s440_s8 = scalar_lea.hbm %s626_s3, 256 }
 0x230   : > { %p437_p4 = scmp.ne.s32.totalorder %s581_s27, %s436_s5  ;;  %p441_p9 = scmp.lt.u32.totalorder %s581_s27, %s626_s3 }
 0x231   : > { %p442_p10 = scmp.lt.u32.totalorder %s440_s8, %s436_s5  ;;  %p444_p12 = scmp.lt.u32.totalorder %s436_s5, %s581_s27 }
 0x232   : > { %p438_p7 = pnand %p437_p4, %p546_p5 }
 0x233   : > { %p443_p11 = por %p442_p10, %p441_p9 }
 0x234   : > { %p439_p8 = pneg %p438_p7 }
 0x235   : > { %p445_p13 = por %p444_p12, %p443_p11 }
 0x237   : > { %p446_p0 = pnand %p445_p13, %p439_p8 }
 0x239   : > { %449 = shalt.err (!%p446_p0)
}
 0x23a   : > { %377 = dma.vmem_to_hbm [thread:$0]  (%p546_p5), %s583_s20, 128, %s581_s27, %s264_s16  }
 0x23b PF: > { %p383_p1 = scmp.ge.s32.totalorder %s484_s15, 2  ;;  %s289_s11 = sand.u32 1, %s472_s12  }
 0x23c   : > { %s290_s17 = scalar_lea.sflag [#allocation3], %s289_s11 }
 0x23d   : > { %p380_p2 = pnand %p383_p1, %p550_p6 }
 0x23f   : > { %467 = dma.done.wait (!%p380_p2), %s290_s17, 128  }
 0x240   : > { %469 = vsyncadd (!%p380_p2), %s290_s17, 4294967168  ;;  %p13_p3 = scmp.ge.s32.totalorder %s533_s18, 4   ;;  %s629_s12 = smov %s476_s13 }
 0x241   : > { %s630_s13 = smov %s480_s14  ;;  %s631_s14 = smov %s544_s21 }
 0x242   : > { %s632_s15 = smov %s533_s18  ;;  %15 = sbr.rel (!%p13_p3) target bundleno = 3 (0x3), region = 73 }
 0x249   :  { %295 = vsyncpa [#allocation3], 1 }
 0x24a   :  { %297 = vsyncpa [#allocation3 + $0x1], 1 }

</bundles_post_ra>
